<compile_context>
chip_gen: v7x
topology: tpu7x:2x2x1
jax: 0.10.0
libtpu: 0.0.40
codegen_flags: <defaults>
</compile_context>

<pallas_src>
import functools

import jax
import jax.numpy as jnp
from jax.experimental import pallas as pl
from jax.experimental.pallas import tpu as pltpu


_LN_EPS = 1e-5
_MIN_SPLIT_ROWS = 256          # minimum rows per TensorCore before splitting (v7x MXU is 256 wide)
_SHRINK_FLOOR = 256            # don't shrink the batch tile below this in the VMEM loop


def _round_up(n, m):
    return (n + m - 1) // m * m


# ---------------------------------------------------------------------------
# Kernel
# ---------------------------------------------------------------------------
def _projection_head_kernel(x_ref, w1_ref, w2_ref, aux_ref, o_ref):
    # aux rows: 0 = b1, 1 = b2, 2 = LN gamma, 3 = LN beta   (all f32, shape (4, P))
    aux = aux_ref[...]
    b1 = aux[0:1, :]
    b2 = aux[1:2, :]
    gamma = aux[2:3, :]
    beta = aux[3:4, :]

    # --- Linear 1: projection (E -> P). Cast the f32 tile to bf16 in-kernel ---
    x_bf = x_ref[...].astype(jnp.bfloat16)
    projected = jnp.dot(x_bf, w1_ref[...], preferred_element_type=jnp.float32) + b1

    # --- GELU (exact, erf-based — matches nn.GELU default), computed in f32 ---
    h = 0.5 * projected * (1.0 + jax.lax.erf(projected * 0.7071067811865476))

    # --- Linear 2: fc (P -> P); activations cast to bf16 for the MXU ----------
    h = jnp.dot(h.astype(jnp.bfloat16), w2_ref[...],
                preferred_element_type=jnp.float32) + b2

    # --- Dropout: identity (eval / inference semantics) -----------------------
    # TODO(synk): training-mode dropout (random mask + 1/(1-p) scale) not emitted.

    # --- Residual + LayerNorm over last dim (f32, biased variance, eps=1e-5) --
    y = h + projected
    mean = jnp.mean(y, axis=-1, keepdims=True)
    centered = y - mean
    var = jnp.mean(centered * centered, axis=-1, keepdims=True)
    out = centered * jax.lax.rsqrt(var + _LN_EPS) * gamma + beta

    o_ref[...] = out.astype(o_ref.dtype)


# ---------------------------------------------------------------------------
# Generation-aware capability / tiling policy
# ---------------------------------------------------------------------------
def _tpu_caps():
    """Returns (vmem_limit_bytes, vmem_budget_bytes, num_tensorcores)."""
    try:
        info = pltpu.get_tpu_info()
        vmem_cap = int(getattr(info, "vmem_capacity_bytes", 64 * 1024 * 1024))
    except Exception:  # no TPU info available at trace time -> conservative (v7x-like)
        vmem_cap = 64 * 1024 * 1024

    if vmem_cap >= 96 * 1024 * 1024:
        # v5e / v6e class: 128 MiB VMEM, single TensorCore per chip.
        return 64 * 1024 * 1024, 48 * 1024 * 1024, 1
    # v7x class: 64 MiB VMEM per TensorCore, 2 TensorCores per chip.
    return 48 * 1024 * 1024, 36 * 1024 * 1024, 2


def _vmem_estimate(bb, E, P):
    x_bytes = 2 * bb * E * 4                      # double-buffered f32 input tile
    o_bytes = 2 * bb * P * 4                      # double-buffered f32 output tile
    w_bytes = 2 * ((E * P + P * P) * 2 + 8 * P * 4)   # worst case: double-buffered params
    tmp = bb * E * 2 + 4 * bb * P * 4             # bf16 x copy + projected / h / y temps
    return x_bytes + o_bytes + w_bytes + tmp


def _choose_block_b(B, E, P, bb_cap, vmem_budget, n_tc):
    """Pick the batch tile: as tall as VMEM allows, dividing B when possible,
    split across 2 TensorCores only when each half keeps >= 256 rows."""
    bb_cap = max(8, int(bb_cap))

    # Multi-TC parts: keep >= 2 grid steps only when each half fills the MXU.
    if n_tc >= 2 and B >= 2 * _MIN_SPLIT_ROWS:
        bb_cap = min(bb_cap, max(_MIN_SPLIT_ROWS, (B // 2) // 8 * 8))

    # Shrink the cap until the VMEM estimate fits the budget.
    while bb_cap > _SHRINK_FLOOR and _vmem_estimate(bb_cap, E, P) > vmem_budget:
        bb_cap = max(_SHRINK_FLOOR, (bb_cap // 2) // 8 * 8)

    # Whole batch fits in one tile: block_shape == full dims, no alignment needed.
    if B <= bb_cap:
        return B, False

    # Otherwise prefer a multiple-of-8 tile that divides B exactly (no padding).
    if B % 8 == 0:
        start = (bb_cap // 8) * 8
        for bb in range(start, 7, -8):
            if B % bb == 0:
                return bb, False

    # Fall back to padding (only for odd batch sizes).
    return max(8, (bb_cap // 8) * 8), True


# ---------------------------------------------------------------------------
# Wrappers
# ---------------------------------------------------------------------------
def prepare_params(w1, b1, w2, b2, gamma, beta):
    """Call ONCE at model-load time.

    Casts the matmul weights to bf16 (MXU-native on v5e/v6e/v7x) and packs the
    four per-channel vectors into a single (4, P) f32 block so the per-call
    kernel sees pre-converted operands (no per-call cast passes over HBM).
    Weights are stored pre-transposed as (in, out).
    """
    P = w1.shape[1]
    aux = jnp.stack([
        jnp.asarray(b1, jnp.float32).reshape(P),
        jnp.asarray(b2, jnp.float32).reshape(P),
        jnp.asarray(gamma, jnp.float32).reshape(P),
        jnp.asarray(beta, jnp.float32).reshape(P),
    ], axis=0)
    return (jnp.asarray(w1, jnp.bfloat16), jnp.asarray(w2, jnp.bfloat16), aux)


@functools.partial(jax.jit,
                   static_argnames=("block_b", "single_buffer_params", "out_dtype"))
def _projection_head_jit(x, w1_bf, w2_bf, aux, *, block_b, single_buffer_params,
                         out_dtype):
    B, E = x.shape
    P = w1_bf.shape[1]

    vmem_limit, vmem_budget, n_tc = _tpu_caps()
    bb, need_pad = _choose_block_b(B, E, P, block_b, vmem_budget, n_tc)

    if need_pad:
        B_run = _round_up(B, bb)
        x_run = jnp.pad(x, ((0, B_run - B), (0, 0)))
    else:
        B_run = B
        x_run = x

    param_kwargs = {}
    if single_buffer_params:
        # Grid-invariant blocks (constant index_map): one VMEM buffer is enough.
        param_kwargs["pipeline_mode"] = pl.Buffered(1)

    out = pl.pallas_call(
        _projection_head_kernel,
        out_shape=jax.ShapeDtypeStruct((B_run, P), out_dtype),
        grid_spec=pltpu.PrefetchScalarGridSpec(
            num_scalar_prefetch=0,
            grid=(B_run // bb,),
            in_specs=[
                pl.BlockSpec((bb, E), lambda i: (i, 0)),                  # x tile (f32)
                pl.BlockSpec((E, P), lambda i: (0, 0), **param_kwargs),   # W1 (in, out), bf16
                pl.BlockSpec((P, P), lambda i: (0, 0), **param_kwargs),   # W2 (in, out), bf16
                pl.BlockSpec((4, P), lambda i: (0, 0), **param_kwargs),   # b1/b2/gamma/beta, f32
            ],
            out_specs=pl.BlockSpec((bb, P), lambda i: (i, 0)),
        ),
        compiler_params=pltpu.CompilerParams(
            dimension_semantics=("parallel",),
            vmem_limit_bytes=vmem_limit,
        ),
    )(x_run, w1_bf, w2_bf, aux)

    return out[:B] if B_run != B else out


_PIPELINE_MODE_OK = None   # probed once; True if pl.Buffered(1) is accepted here


def projection_head(x, params, *, block_b=1024, out_dtype=jnp.float32):
    """x: (B, E) float32. params: output of prepare_params(). Returns (B, P).

    Note: matmuls use bf16 operands with f32 MXU accumulation (inference-grade
    accuracy vs. the all-f32 PyTorch module); GELU / residual / LayerNorm are f32.
    """
    global _PIPELINE_MODE_OK
    w1_bf, w2_bf, aux = params
    if _PIPELINE_MODE_OK is None:
        try:
            out = _projection_head_jit(x, w1_bf, w2_bf, aux, block_b=block_b,
                                       single_buffer_params=True,
                                       out_dtype=out_dtype)
            _PIPELINE_MODE_OK = True
            return out
        except (TypeError, ValueError, NotImplementedError,
                pltpu.LoweringException):
            # Only the specific errors a rejected pipeline_mode kwarg can raise.
            _PIPELINE_MODE_OK = False
    return _projection_head_jit(x, w1_bf, w2_bf, aux, block_b=block_b,
                                single_buffer_params=_PIPELINE_MODE_OK,
                                out_dtype=out_dtype)


# ---------------------------------------------------------------------------
# Reference & self-test
# ---------------------------------------------------------------------------
def reference(x, w1, b1, w2, b2, gamma, beta, matmul_dtype=jnp.float32):
    xm = x.astype(matmul_dtype)
    w1m = w1.astype(matmul_dtype)
    w2m = w2.astype(matmul_dtype)
    projected = jnp.dot(xm, w1m, preferred_element_type=jnp.float32) + b1
    h = jax.nn.gelu(projected, approximate=False)
    h = jnp.dot(h.astype(matmul_dtype), w2m, preferred_element_type=jnp.float32) + b2
    y = h + projected
    mean = y.mean(-1, keepdims=True)
    var = ((y - mean) ** 2).mean(-1, keepdims=True)
    return (y - mean) / jnp.sqrt(var + _LN_EPS) * gamma + beta


if __name__ == "__main__":
    # Small, TPU-friendly shapes consistent with the module (CFG uses
    # embedding_dim=2048/768, projection_dim=256; embedding scaled down here).
    B, E, P = 64, 512, 256

    key = jax.random.PRNGKey(0)
    kx, kw1, kb1, kw2, kb2, kg, kbt = jax.random.split(key, 7)

    x = jax.random.normal(kx, (B, E), dtype=jnp.float32)
    # nn.Linear-style params, stored transposed as (in, out) for the kernel.
    w1 = jax.random.normal(kw1, (E, P), dtype=jnp.float32) * (1.0 / jnp.sqrt(E))
    b1 = jax.random.normal(kb1, (1, P), dtype=jnp.float32) * 0.01
    w2 = jax.random.normal(kw2, (P, P), dtype=jnp.float32) * (1.0 / jnp.sqrt(P))
    b2 = jax.random.normal(kb2, (1, P), dtype=jnp.float32) * 0.01
    # LayerNorm affine params (PyTorch default is ones/zeros; perturbed here).
    gamma = 1.0 + 0.1 * jax.random.normal(kg, (1, P), dtype=jnp.float32)
    beta = 0.1 * jax.random.normal(kbt, (1, P), dtype=jnp.float32)

    params = prepare_params(w1, b1, w2, b2, gamma, beta)   # one-time bf16 cast + pack
    out = projection_head(x, params)
    out = jax.block_until_ready(out)
    assert out.shape == (B, P)

    # Tight check vs. a reference that also does bf16 matmuls (kernel plumbing),
    # loose check vs. the full-f32 reference (module semantics + bf16 rounding).
    ref_bf16 = reference(x, w1, b1, w2, b2, gamma, beta, matmul_dtype=jnp.bfloat16)
    ref_f32 = reference(x, w1, b1, w2, b2, gamma, beta, matmul_dtype=jnp.float32)
    assert jnp.allclose(out, ref_bf16, atol=5e-3, rtol=5e-3), "mismatch vs bf16 reference"
    assert jnp.allclose(out, ref_f32, atol=6e-2, rtol=6e-2), "mismatch vs f32 reference"

    print("KERNEL_OK")
</pallas_src>

<mosaic_0001>
module attributes {stable_mosaic.version = 11 : i64} {
  func.func @_projection_head_kernel(%arg0: i32, %arg1: memref<64x512xf32, #tpu.memory_space<vmem>>, %arg2: memref<512x256xbf16, #tpu.memory_space<vmem>>, %arg3: memref<256x256xbf16, #tpu.memory_space<vmem>>, %arg4: memref<4x256xf32, #tpu.memory_space<vmem>>, %arg5: memref<64x256xf32, #tpu.memory_space<vmem>>) attributes {dimension_semantics = [#tpu.dimension_semantics<parallel>], iteration_bounds = array<i64: 1>, scalar_prefetch = 0 : i64, scratch_operands = 0 : i64, tpu.core_type = #tpu.core_type<tc>, window_params = [{transform_indices = @transform_0, window_bounds = array<i64: 64, 512>}, {pipeline_mode = #tpu.pipeline_mode<synchronous>, transform_indices = @transform_1, window_bounds = array<i64: 512, 256>}, {pipeline_mode = #tpu.pipeline_mode<synchronous>, transform_indices = @transform_2, window_bounds = array<i64: 256, 256>}, {pipeline_mode = #tpu.pipeline_mode<synchronous>, transform_indices = @transform_3, window_bounds = array<i64: 4, 256>}, {transform_indices = @transform_4, window_bounds = array<i64: 64, 256>}]} {
    %c0 = arith.constant 0 : index
    %c0_0 = arith.constant 0 : index
    %0 = vector.load %arg4[%c0, %c0_0] : memref<4x256xf32, #tpu.memory_space<vmem>>, vector<4x256xf32>
    %1 = vector.extract_strided_slice %0 {offsets = [0, 0], sizes = [1, 256], strides = [1, 1]} : vector<4x256xf32> to vector<1x256xf32>
    %2 = vector.extract_strided_slice %0 {offsets = [1, 0], sizes = [1, 256], strides = [1, 1]} : vector<4x256xf32> to vector<1x256xf32>
    %3 = vector.extract_strided_slice %0 {offsets = [2, 0], sizes = [1, 256], strides = [1, 1]} : vector<4x256xf32> to vector<1x256xf32>
    %4 = vector.extract_strided_slice %0 {offsets = [3, 0], sizes = [1, 256], strides = [1, 1]} : vector<4x256xf32> to vector<1x256xf32>
    %c0_1 = arith.constant 0 : index
    %c0_2 = arith.constant 0 : index
    %5 = vector.load %arg1[%c0_1, %c0_2] : memref<64x512xf32, #tpu.memory_space<vmem>>, vector<64x512xf32>
    %6 = arith.truncf %5 : vector<64x512xf32> to vector<64x512xbf16>
    %c0_3 = arith.constant 0 : index
    %c0_4 = arith.constant 0 : index
    %7 = vector.load %arg2[%c0_3, %c0_4] : memref<512x256xbf16, #tpu.memory_space<vmem>>, vector<512x256xbf16>
    %cst = arith.constant dense<0.000000e+00> : vector<64x256xf32>
    %8 = tpu.matmul %6, %7, %cst {dimension_numbers = #tpu.dot_dimension_numbers<[1], [0], [0], [1], [0, 0, 1, 1], [], []>} : vector<64x512xbf16>, vector<512x256xbf16>, vector<64x256xf32> -> vector<64x256xf32>
    %9 = vector.broadcast %1 : vector<1x256xf32> to vector<64x256xf32>
    %10 = arith.addf %8, %9 : vector<64x256xf32>
    %cst_5 = arith.constant 5.000000e-01 : f32
    %11 = vector.broadcast %cst_5 : f32 to vector<64x256xf32>
    %12 = arith.mulf %11, %10 : vector<64x256xf32>
    %cst_6 = arith.constant 0.707106769 : f32
    %13 = vector.broadcast %cst_6 : f32 to vector<64x256xf32>
    %14 = arith.mulf %10, %13 : vector<64x256xf32>
    %15 = math.erf %14 : vector<64x256xf32>
    %cst_7 = arith.constant 1.000000e+00 : f32
    %16 = vector.broadcast %cst_7 : f32 to vector<64x256xf32>
    %17 = arith.addf %16, %15 : vector<64x256xf32>
    %18 = arith.mulf %12, %17 : vector<64x256xf32>
    %19 = arith.truncf %18 : vector<64x256xf32> to vector<64x256xbf16>
    %c0_8 = arith.constant 0 : index
    %c0_9 = arith.constant 0 : index
    %20 = vector.load %arg3[%c0_8, %c0_9] : memref<256x256xbf16, #tpu.memory_space<vmem>>, vector<256x256xbf16>
    %cst_10 = arith.constant dense<0.000000e+00> : vector<64x256xf32>
    %21 = tpu.matmul %19, %20, %cst_10 {dimension_numbers = #tpu.dot_dimension_numbers<[1], [0], [0], [1], [0, 0, 1, 1], [], []>} : vector<64x256xbf16>, vector<256x256xbf16>, vector<64x256xf32> -> vector<64x256xf32>
    %22 = vector.broadcast %2 : vector<1x256xf32> to vector<64x256xf32>
    %23 = arith.addf %21, %22 : vector<64x256xf32>
    %24 = arith.addf %23, %10 : vector<64x256xf32>
    %cst_11 = arith.constant dense<0.000000e+00> : vector<64xf32>
    %25 = vector.multi_reduction <add>, %24, %cst_11 [1] : vector<64x256xf32> to vector<64xf32>
    %26 = vector.shape_cast %25 : vector<64xf32> to vector<64x1xf32>
    %cst_12 = arith.constant 2.560000e+02 : f32
    %27 = vector.broadcast %cst_12 : f32 to vector<64x1xf32>
    %28 = arith.divf %26, %27 : vector<64x1xf32>
    %29 = vector.broadcast %28 : vector<64x1xf32> to vector<64x256xf32>
    %30 = arith.subf %24, %29 : vector<64x256xf32>
    %31 = arith.mulf %30, %30 : vector<64x256xf32>
    %cst_13 = arith.constant dense<0.000000e+00> : vector<64xf32>
    %32 = vector.multi_reduction <add>, %31, %cst_13 [1] : vector<64x256xf32> to vector<64xf32>
    %33 = vector.shape_cast %32 : vector<64xf32> to vector<64x1xf32>
    %cst_14 = arith.constant 2.560000e+02 : f32
    %34 = vector.broadcast %cst_14 : f32 to vector<64x1xf32>
    %35 = arith.divf %33, %34 : vector<64x1xf32>
    %cst_15 = arith.constant 9.99999974E-6 : f32
    %36 = vector.broadcast %cst_15 : f32 to vector<64x1xf32>
    %37 = arith.addf %35, %36 : vector<64x1xf32>
    %38 = math.rsqrt %37 : vector<64x1xf32>
    %39 = vector.broadcast %38 : vector<64x1xf32> to vector<64x256xf32>
    %40 = arith.mulf %30, %39 : vector<64x256xf32>
    %41 = vector.broadcast %3 : vector<1x256xf32> to vector<64x256xf32>
    %42 = arith.mulf %40, %41 : vector<64x256xf32>
    %43 = vector.broadcast %4 : vector<1x256xf32> to vector<64x256xf32>
    %44 = arith.addf %42, %43 : vector<64x256xf32>
    %c0_16 = arith.constant 0 : index
    %c0_17 = arith.constant 0 : index
    %45 = vector.load %arg5[%c0_16, %c0_17] : memref<64x256xf32, #tpu.memory_space<vmem>>, vector<64x256xf32>
    tpu.vector_store %arg5[%c0_16, %c0_17], %44 {strides = array<i32>} : memref<64x256xf32, #tpu.memory_space<vmem>>, vector<64x256xf32>,
    return
  }
  func.func @transform_0(%arg0: i32) -> (i32, i32) {
    %c0_i32 = arith.constant 0 : i32
    %c0_i32_0 = arith.constant 0 : i32
    return %arg0, %c0_i32 : i32, i32
  }
  func.func @transform_1(%arg0: i32) -> (i32, i32) {
    %c0_i32 = arith.constant 0 : i32
    %c0_i32_0 = arith.constant 0 : i32
    %c0_i32_1 = arith.constant 0 : i32
    return %c0_i32, %c0_i32_0 : i32, i32
  }
  func.func @transform_2(%arg0: i32) -> (i32, i32) {
    %c0_i32 = arith.constant 0 : i32
    %c0_i32_0 = arith.constant 0 : i32
    %c0_i32_1 = arith.constant 0 : i32
    return %c0_i32, %c0_i32_0 : i32, i32
  }
  func.func @transform_3(%arg0: i32) -> (i32, i32) {
    %c0_i32 = arith.constant 0 : i32
    %c0_i32_0 = arith.constant 0 : i32
    %c0_i32_1 = arith.constant 0 : i32
    return %c0_i32, %c0_i32_0 : i32, i32
  }
  func.func @transform_4(%arg0: i32) -> (i32, i32) {
    %c0_i32 = arith.constant 0 : i32
    %c0_i32_0 = arith.constant 0 : i32
    return %arg0, %c0_i32 : i32, i32
  }
}

</mosaic_0001>

<bundles_post_ra>
// kernel: _projection_head_jit.1
= control target key start
LH: loop header
LB: loop body
LE: loop exit
PB: predicated region body
PF: predicated region fallthrough
CT: control target
= control target key end

     0   :  { %9 = vsyncpa [#allocation3], 0  ;;  %s2031_s0 = inlined_call_operand.hbm [shape: f32[64,512], index: 0, kind: input, shape index: {}]   ;;  %s2032_s1 = inlined_call_operand.hbm [shape: bf16[512,256], index: 1, kind: input, shape index: {}]   ;;  %s2033_s2 = inlined_call_operand.hbm [shape: bf16[256,256], index: 2, kind: input, shape index: {}]   ;;  %s2034_s3 = inlined_call_operand.vmem [shape: f32[4,256], index: 3, kind: input, shape index: {}]   ;;  %s2035_s4 = inlined_call_operand.hbm [shape: f32[64,256], index: 4, kind: output, shape index: {}]  }
   0x1   :  { %10 = vsyncpa [#allocation6], 0 }
   0x2   :  { %11 = vsyncpa [#allocation4], 0  ;;  %s1699_s15 = smov [#allocation5]   ;;  %s1605_s19 = scalar_lea.hbm %s2032_s1, 8192 }
   0x3   :  { %s29_s16 = sshll.u32 %s1699_s15, 4  ;;  %p1606_p0 = scmp.ne.s32.totalorder %s2032_s1, %s1605_s19  ;;  %s30_s16 = int_to_ptr.vmem [resolvable:$true] %s29_s16 }
   0x4   :  { %p1609_p1 = scmp.lt.u32.totalorder %s1605_s19, %s2032_s1 }
   0x6   :  { %p1611_p2 = pnand %p1609_p1, %p1606_p0 }
   0x8   :  { %1614 = shalt.err (!%p1611_p2)
}
   0x9   :  { %s1615_s24 = scalar_lea.vmem %s30_s16, 8192  ;;  %p1620_p4 = scmp.lt.s32.totalorder %s30_s16, %s30_s16 }
   0xa   :  { %p1616_p3 = scmp.ne.s32.totalorder %s30_s16, %s1615_s24  ;;  %p1621_p5 = scmp.lt.s32.totalorder %s1615_s24, %s1615_s24 }
   0xc   :  { %p1622_p6 = por %p1621_p5, %p1620_p4 }
   0xe   :  { %p1623_p7 = pnand %p1622_p6, %p1616_p3 }
  0x10   :  { %1626 = shalt.err (!%p1623_p7)
}
  0x11   :  { %s1700_s25 = smov 128   ;;  %s1701_s26 = smov 8  }
  0x12   :  { %35 = dma.hbm_to_vmem [thread:$0]  %s2032_s1, 8192, %s30_s16, [#allocation6], %s1700_s25, %s1700_s25, %s1701_s26  }
  0x13   :  { %s1702_s29 = smov [#allocation2]   ;;  %s1627_s7 = scalar_lea.hbm %s2031_s0, 4096 }
  0x14   :  { %s17_s30 = sshll.u32 %s1702_s29, 4  ;;  %p1628_p8 = scmp.ne.s32.totalorder %s2031_s0, %s1627_s7  ;;  %s18_s30 = int_to_ptr.vmem [resolvable:$true] %s17_s30 }
  0x15   :  { %p1631_p9 = scmp.lt.u32.totalorder %s1627_s7, %s2031_s0 }
  0x17   :  { %p1633_p10 = pnand %p1631_p9, %p1628_p8 }
  0x19   :  { %1636 = shalt.err (!%p1633_p10)
}
  0x1a   :  { %s1637_s12 = scalar_lea.vmem %s18_s30, 4096  ;;  %p1642_p12 = scmp.lt.s32.totalorder %s18_s30, %s18_s30 }
  0x1b   :  { %p1638_p11 = scmp.ne.s32.totalorder %s18_s30, %s1637_s12  ;;  %p1643_p13 = scmp.lt.s32.totalorder %s1637_s12, %s1637_s12 }
  0x1d   :  { %p1644_p0 = por %p1643_p13, %p1642_p12 }
  0x1f   :  { %p1645_p1 = pnand %p1644_p0, %p1638_p11 }
  0x21   :  { %1648 = shalt.err (!%p1645_p1)
}
  0x22   :  { %s1703_s1 = smov 512   ;;  %s1704_s13 = smov 32  }
  0x23   :  { %23 = dma.hbm_to_vmem [thread:$0]  %s2031_s0, 4096, %s18_s30, [#allocation3], %s1703_s1, %s1703_s1, %s1704_s13  }
  0x24   :  { %s1705_s16 = smov [#allocation7]   ;;  %s1649_s20 = scalar_lea.hbm %s2033_s2, 4096 }
  0x25   :  { %s41_s17 = sshll.u32 %s1705_s16, 4  ;;  %p1650_p2 = scmp.ne.s32.totalorder %s2033_s2, %s1649_s20  ;;  %s42_s17 = int_to_ptr.vmem [resolvable:$true] %s41_s17 }
  0x26   :  { %p1653_p3 = scmp.lt.u32.totalorder %s1649_s20, %s2033_s2 }
  0x28   :  { %p1655_p4 = pnand %p1653_p3, %p1650_p2 }
  0x2a   :  { %1658 = shalt.err (!%p1655_p4)
}
  0x2b   :  { %s1659_s27 = scalar_lea.vmem %s42_s17, 4096  ;;  %p1664_p6 = scmp.lt.s32.totalorder %s42_s17, %s42_s17 }
  0x2c   :  { %p1660_p5 = scmp.ne.s32.totalorder %s42_s17, %s1659_s27  ;;  %p1665_p7 = scmp.lt.s32.totalorder %s1659_s27, %s1659_s27 }
  0x2e   :  { %p1666_p8 = por %p1665_p7, %p1664_p6 }
  0x30   :  { %p1667_p9 = pnand %p1666_p8, %p1660_p5 }
  0x32   :  { %1670 = shalt.err (!%p1667_p9)
}
  0x33   :  { %47 = dma.hbm_to_vmem [thread:$0]  %s2033_s2, 4096, %s42_s17, [#allocation6], %s1700_s25, %s1700_s25, %s1701_s26  }
  0x34   :  { %1693 = dma.done.wait [#allocation3], 4096  }
  0x35   :  { %1694 = vsyncadd [#allocation3], 4294963200 }
  0x36   :  { %1695 = dma.done.wait [#allocation6], 12288  }
  0x37   :  { %1696 = vsyncadd [#allocation6], 4294955008  ;;  %v1413_v0 = vld [vmem:[#allocation5 + $0x4] ss:$8 sps:$4 sm:$0xff]   ;;  %v1415_v1 = vld [vmem:[#allocation5] ss:$8 sps:$4 sm:$0xff]  }
  0x38   :  { %511 = vmatprep.subr.bf16.mxu0 %v1413_v0  ;;  %v1416_v2 = vld [vmem:[#allocation5 + $0x14] ss:$8 sps:$4 sm:$0xff]   ;;  %v1418_v3 = vld [vmem:[#allocation5 + $0x10] ss:$8 sps:$4 sm:$0xff]   ;;  %v1419_v4 = vld [vmem:[#allocation5 + $0x24] ss:$8 sps:$4 sm:$0xff]  }
  0x39   :  { %512 = vmatpush1.bf16.msra.mxu0 %v1415_v1  ;;  %v1421_v5 = vld [vmem:[#allocation5 + $0x20] ss:$8 sps:$4 sm:$0xff]   ;;  %v1422_v6 = vld [vmem:[#allocation5 + $0x34] ss:$8 sps:$4 sm:$0xff]   ;;  %v1424_v7 = vld [vmem:[#allocation5 + $0x30] ss:$8 sps:$4 sm:$0xff]  }
  0x3a   :  { %513 = vmatprep.subr.bf16.mxu0 %v1416_v2  ;;  %v1425_v8 = vld [vmem:[#allocation5 + $0x44] ss:$8 sps:$4 sm:$0xff]   ;;  %v1427_v9 = vld [vmem:[#allocation5 + $0x40] ss:$8 sps:$4 sm:$0xff]   ;;  %v1428_v10 = vld [vmem:[#allocation5 + $0x54] ss:$8 sps:$4 sm:$0xff]  }
  0x3b   :  { %v1430_v11 = vld [vmem:[#allocation5 + $0x50] ss:$8 sps:$4 sm:$0xff]   ;;  %v1431_v12 = vld [vmem:[#allocation5 + $0x64] ss:$8 sps:$4 sm:$0xff]   ;;  %v1433_v16 = vld [vmem:[#allocation5 + $0x60] ss:$8 sps:$4 sm:$0xff]  }
  0x3c   :  { %v61_v13 = vld [vmem:[#allocation2 + $0x8] sm:$0xff]  ;;  %v1434_v17 = vld [vmem:[#allocation5 + $0x74] ss:$8 sps:$4 sm:$0xff]   ;;  %v1436_v18 = vld [vmem:[#allocation5 + $0x70] ss:$8 sps:$4 sm:$0xff]  }
  0x3d   :  { %514 = vmatpush1.bf16.msra.mxu0 %v1418_v3  ;;  %v65_v14 = vld [vmem:[#allocation2 + $0x28] sm:$0xff]  ;;  %v1440_v21 = vld [vmem:[#allocation5 + $0x94] ss:$8 sps:$4 sm:$0xff]   ;;  %v1442_v22 = vld [vmem:[#allocation5 + $0x90] ss:$8 sps:$4 sm:$0xff]  }
  0x3e   :  { %515 = vmatprep.subr.bf16.mxu0 %v1419_v4  ;;  %v93_v15 = vpack.c.bf16 %v65_v14, %v61_v13  ;;  %v1437_v19 = vld [vmem:[#allocation5 + $0x84] ss:$8 sps:$4 sm:$0xff]   ;;  %v1439_v20 = vld [vmem:[#allocation5 + $0x80] ss:$8 sps:$4 sm:$0xff]   ;;  %v1446_v25 = vld [vmem:[#allocation5 + $0xb4] ss:$8 sps:$4 sm:$0xff]  }
  0x3f   :  { %v1443_v23 = vld [vmem:[#allocation5 + $0xa4] ss:$8 sps:$4 sm:$0xff]   ;;  %v1445_v24 = vld [vmem:[#allocation5 + $0xa0] ss:$8 sps:$4 sm:$0xff]   ;;  %v1448_v26 = vld [vmem:[#allocation5 + $0xb0] ss:$8 sps:$4 sm:$0xff]  }
  0x40   :  { %543 = vmatprep.mubr.bf16.mxu0 %v93_v15  ;;  %v1449_v27 = vld [vmem:[#allocation5 + $0xc4] ss:$8 sps:$4 sm:$0xff]   ;;  %v1451_v28 = vld [vmem:[#allocation5 + $0xc0] ss:$8 sps:$4 sm:$0xff]   ;;  %v1452_v29 = vld [vmem:[#allocation5 + $0xd4] ss:$8 sps:$4 sm:$0xff]  }
  0x41   :  { %516 = vmatpush1.bf16.msra.mxu0 %v1421_v5  ;;  %v1454_v30 = vld [vmem:[#allocation5 + $0xd0] ss:$8 sps:$4 sm:$0xff]   ;;  %v1455_v31 = vld [vmem:[#allocation5 + $0xe4] ss:$8 sps:$4 sm:$0xff]   ;;  %v1511_v33 = vld [vmem:[#allocation7] ss:$8 sps:$4 sm:$0xff]  }
  0x42   :  { %517 = vmatprep.subr.bf16.mxu0 %v1422_v6  ;;  %v1509_v32 = vld [vmem:[#allocation7 + $0x4] ss:$8 sps:$4 sm:$0xff]   ;;  %v1457_v34 = vld [vmem:[#allocation5 + $0xe0] ss:$8 sps:$4 sm:$0xff]   ;;  %v1512_v35 = vld [vmem:[#allocation7 + $0x14] ss:$8 sps:$4 sm:$0xff]  }
  0x43   :  { %v1458_v36 = vld [vmem:[#allocation5 + $0xf4] ss:$8 sps:$4 sm:$0xff]   ;;  %955 = vmatprep.subr.bf16.mxu1 %v1509_v32  ;;  %v1460_v37 = vld [vmem:[#allocation5 + $0xf0] ss:$8 sps:$4 sm:$0xff]   ;;  %v1463_v39 = vld [vmem:[#allocation5 + $0x104] ss:$8 sps:$4 sm:$0xff]  }
  0x44   :  { %956 = vmatpush1.bf16.msra.mxu1 %v1511_v33  ;;  %v1514_v38 = vld [vmem:[#allocation7 + $0x10] ss:$8 sps:$4 sm:$0xff]   ;;  %v60_v40 = vld [vmem:[#allocation2] sm:$0xff]  ;;  %v69_v43 = vld [vmem:[#allocation2 + $0x48] sm:$0xff] }
  0x45   :  { %518 = vmatpush1.bf16.msra.mxu0 %v1424_v7  ;;  %957 = vmatprep.subr.bf16.mxu1 %v1512_v35  ;;  %v1515_v41 = vld [vmem:[#allocation7 + $0x24] ss:$8 sps:$4 sm:$0xff]   ;;  %v1517_v45 = vld [vmem:[#allocation7 + $0x20] ss:$8 sps:$4 sm:$0xff]   ;;  %v1518_v47 = vld [vmem:[#allocation7 + $0x34] ss:$8 sps:$4 sm:$0xff]  }
  0x46   :  { %519 = vmatprep.subr.bf16.mxu0 %v1425_v8  ;;  %v64_v42 = vld [vmem:[#allocation2 + $0x20] sm:$0xff]  ;;  %v73_v44 = vld [vmem:[#allocation2 + $0x68] sm:$0xff]  ;;  %v1466_v50 = vld [vmem:[#allocation5 + $0x114] ss:$8 sps:$4 sm:$0xff]  }
  0x47   :  { %v92_v46 = vpack.c.bf16 %v64_v42, %v60_v40  ;;  %v1461_v48 = vld [vmem:[#allocation5 + $0x100] ss:$8 sps:$4 sm:$0xff]   ;;  %v97_v49 = vpack.c.bf16 %v73_v44, %v69_v43  ;;  %v1464_v51 = vld [vmem:[#allocation5 + $0x110] ss:$8 sps:$4 sm:$0xff]   ;;  %v1469_v55 = vld [vmem:[#allocation5 + $0x124] ss:$8 sps:$4 sm:$0xff]  }
  0x48   :  { %958 = vmatpush1.bf16.msra.mxu1 %v1514_v38  ;;  %v68_v52 = vld [vmem:[#allocation2 + $0x40] sm:$0xff]  ;;  %v1520_v54 = vld [vmem:[#allocation7 + $0x30] ss:$8 sps:$4 sm:$0xff]   ;;  %v77_v56 = vld [vmem:[#allocation2 + $0x88] sm:$0xff] }
  0x49   :  { %520 = vmatpush1.bf16.msra.mxu0 %v1427_v9  ;;  %959 = vmatprep.subr.bf16.mxu1 %v1515_v41  ;;  %v72_v53 = vld [vmem:[#allocation2 + $0x60] sm:$0xff]  ;;  %v81_v57 = vld [vmem:[#allocation2 + $0xa8] sm:$0xff]  ;;  %v1524_v60 = vld [vmem:[#allocation7 + $0x54] ss:$8 sps:$4 sm:$0xff]  }
  0x4a   :  { %521 = vmatprep.subr.bf16.mxu0 %v1428_v10  ;;  %v1521_v58 = vld [vmem:[#allocation7 + $0x44] ss:$8 sps:$4 sm:$0xff]   ;;  %v1523_v59 = vld [vmem:[#allocation7 + $0x40] ss:$8 sps:$4 sm:$0xff]   ;;  %v96_v61 = vpack.c.bf16 %v72_v53, %v68_v52  ;;  %v101_v63 = vpack.c.bf16 %v81_v57, %v77_v56  ;;  %v1472_v0 = vld [vmem:[#allocation5 + $0x134] ss:$8 sps:$4 sm:$0xff]  }
  0x4b   :  { %v1467_v62 = vld [vmem:[#allocation5 + $0x120] ss:$8 sps:$4 sm:$0xff]   ;;  %v1526_v1 = vld [vmem:[#allocation7 + $0x50] ss:$8 sps:$4 sm:$0xff]   ;;  %v1527_v2 = vld [vmem:[#allocation7 + $0x64] ss:$8 sps:$4 sm:$0xff]  }
  0x4c   :  { %960 = vmatpush1.bf16.msra.mxu1 %v1517_v45  ;;  %v1470_v3 = vld [vmem:[#allocation5 + $0x130] ss:$8 sps:$4 sm:$0xff]   ;;  %v76_v4 = vld [vmem:[#allocation2 + $0x80] sm:$0xff]  ;;  %v85_v7 = vld [vmem:[#allocation2 + $0xc8] sm:$0xff] }
  0x4d   :  { %522 = vmatpush1.bf16.msra.mxu0 %v1430_v11  ;;  %961 = vmatprep.subr.bf16.mxu1 %v1518_v47  ;;  %v80_v5 = vld [vmem:[#allocation2 + $0xa0] sm:$0xff]  ;;  %v89_v8 = vld [vmem:[#allocation2 + $0xe8] sm:$0xff]  ;;  %v1530_v11 = vld [vmem:[#allocation7 + $0x74] ss:$8 sps:$4 sm:$0xff]  }
  0x4e   :  { %523 = vmatprep.subr.bf16.mxu0 %v1431_v12  ;;  %v1475_v6 = vld [vmem:[#allocation5 + $0x144] ss:$8 sps:$4 sm:$0xff]   ;;  %v1529_v9 = vld [vmem:[#allocation7 + $0x60] ss:$8 sps:$4 sm:$0xff]   ;;  %v100_v10 = vpack.c.bf16 %v80_v5, %v76_v4  ;;  %v105_v13 = vpack.c.bf16 %v89_v8, %v85_v7  ;;  %v1478_v14 = vld [vmem:[#allocation5 + $0x154] ss:$8 sps:$4 sm:$0xff]  }
  0x4f   :  { %v1473_v12 = vld [vmem:[#allocation5 + $0x140] ss:$8 sps:$4 sm:$0xff]   ;;  %v1532_v15 = vld [vmem:[#allocation7 + $0x70] ss:$8 sps:$4 sm:$0xff]   ;;  %v1490_v33 = vld [vmem:[#allocation5 + $0x194] ss:$8 sps:$4 sm:$0xff]  }
  0x50   :  { %962 = vmatpush1.bf16.msra.mxu1 %v1520_v54  ;;  %v1485_v32 = vld [vmem:[#allocation5 + $0x180] ss:$8 sps:$4 sm:$0xff]   ;;  %v1493_v35 = vld [vmem:[#allocation5 + $0x1a4] ss:$8 sps:$4 sm:$0xff]   ;;  %v1494_v38 = vld [vmem:[#allocation5 + $0x1b0] ss:$8 sps:$4 sm:$0xff]  }
  0x51   :  { %524 = vmatpush1.bf16.msra.mxu0 %v1433_v16  ;;  %963 = vmatprep.subr.bf16.mxu1 %v1521_v58  ;;  %v1533_v16 = vld [vmem:[#allocation7 + $0x84] ss:$8 sps:$4 sm:$0xff]   ;;  %v1497_v40 = vld [vmem:[#allocation5 + $0x1c0] ss:$8 sps:$4 sm:$0xff]   ;;  %v1502_v41 = vld [vmem:[#allocation5 + $0x1d4] ss:$8 sps:$4 sm:$0xff]  }
  0x52   :  { %525 = vmatprep.subr.bf16.mxu0 %v1434_v17  ;;  %v1476_v17 = vld [vmem:[#allocation5 + $0x150] ss:$8 sps:$4 sm:$0xff]   ;;  %v1505_v43 = vld [vmem:[#allocation5 + $0x1e4] ss:$8 sps:$4 sm:$0xff]   ;;  %v1503_v44 = vld [vmem:[#allocation5 + $0x1e0] ss:$8 sps:$4 sm:$0xff]  }
  0x53   :  { %v1500_v42 = vld [vmem:[#allocation5 + $0x1d0] ss:$8 sps:$4 sm:$0xff]   ;;  %v1508_v45 = vld [vmem:[#allocation5 + $0x1f4] ss:$8 sps:$4 sm:$0xff]   ;;  %v1539_v4 = vld [vmem:[#allocation7 + $0xa4] ss:$8 sps:$4 sm:$0xff]  }
  0x54   :  { %964 = vmatpush1.bf16.msra.mxu1 %v1523_v59  ;;  %v62_v47 = vld [vmem:[#allocation2 + $0x10] sm:$0xff]  ;;  %v83_v56 = vld [vmem:[#allocation2 + $0xb8] sm:$0xff]  ;;  %v1541_v5 = vld [vmem:[#allocation7 + $0xa0] ss:$8 sps:$4 sm:$0xff]  }
  0x55   :  { %526 = vmatpush1.bf16.msra.mxu0 %v1436_v18  ;;  %965 = vmatprep.subr.bf16.mxu1 %v1524_v60  ;;  %v84_v18 = vld [vmem:[#allocation2 + $0xc0] sm:$0xff]  ;;  %v70_v53 = vld [vmem:[#allocation2 + $0x50] sm:$0xff] }
  0x56   :  { %527 = vmatprep.subr.bf16.mxu0 %v1437_v19  ;;  %v88_v19 = vld [vmem:[#allocation2 + $0xe0] sm:$0xff]  ;;  %v74_v54 = vld [vmem:[#allocation2 + $0x70] sm:$0xff] }
  0x57   :  { %v98_v57 = vpack.c.bf16 %v74_v54, %v70_v53  ;;  %v78_v59 = vld [vmem:[#allocation2 + $0x90] sm:$0xff]  ;;  %v1545_v8 = vld [vmem:[#allocation7 + $0xc4] ss:$8 sps:$4 sm:$0xff]  }
  0x58   :  { %966 = vmatpush1.bf16.msra.mxu1 %v1526_v1  ;;  %v82_v60 = vld [vmem:[#allocation2 + $0xb0] sm:$0xff] }
  0x59   :  { %528 = vmatpush1.bf16.msra.mxu0 %v1439_v20  ;;  %967 = vmatprep.subr.bf16.mxu1 %v1527_v2  ;;  %v1481_v20 = vld [vmem:[#allocation5 + $0x164] ss:$8 sps:$4 sm:$0xff]   ;;  %v86_v1 = vld [vmem:[#allocation2 + $0xd0] sm:$0xff] }
  0x5a   :  { %529 = vmatprep.subr.bf16.mxu0 %v1440_v21  ;;  %v63_v21 = vld [vmem:[#allocation2 + $0x18] sm:$0xff]  ;;  %v90_v2 = vld [vmem:[#allocation2 + $0xf0] sm:$0xff] }
  0x5b   :  { %v1544_v7 = vld [vmem:[#allocation7 + $0xb0] ss:$8 sps:$4 sm:$0xff]  }
  0x5c   :  { %968 = vmatpush1.bf16.msra.mxu1 %v1529_v9  ;;  %v1547_v9 = vld [vmem:[#allocation7 + $0xc0] ss:$8 sps:$4 sm:$0xff]  }
  0x5d   :  { %530 = vmatpush1.bf16.msra.mxu0 %v1442_v22  ;;  %969 = vmatprep.subr.bf16.mxu1 %v1530_v11  ;;  %v67_v22 = vld [vmem:[#allocation2 + $0x38] sm:$0xff] }
  0x5e   :  { %531 = vmatprep.subr.bf16.mxu0 %v1443_v23  ;;  %v1535_v23 = vld [vmem:[#allocation7 + $0x80] ss:$8 sps:$4 sm:$0xff]   ;;  %v1550_v11 = vld [vmem:[#allocation7 + $0xd0] ss:$8 sps:$4 sm:$0xff]  }
  0x60   :  { %970 = vmatpush1.bf16.msra.mxu1 %v1532_v15  ;;  %v1556_v15 = vld [vmem:[#allocation7 + $0xf0] ss:$8 sps:$4 sm:$0xff]  }
  0x61   :  { %532 = vmatpush1.bf16.msra.mxu0 %v1445_v24  ;;  %v104_v24 = vpack.c.bf16 %v88_v19, %v84_v18  ;;  %971 = vmatprep.subr.bf16.mxu1 %v1533_v16  ;;  %v173_v16 = vlaneseq  ;;  %v1782_v19 = vld [vmem:[%s2034_s3] sm:$0xff]  ;;  %s1706_s3 = smov [#allocation8]  }
  0x62   :  { %533 = vmatprep.subr.bf16.mxu0 %v1446_v25  ;;  %v1536_v25 = vld [vmem:[#allocation7 + $0x94] ss:$8 sps:$4 sm:$0xff]   ;;  %s1262_s26 = sshll.u32 %s1706_s3, 4  ;;  %s1263_s26 = int_to_ptr.vmem [resolvable:$true] %s1262_s26 }
  0x63   :  { %s1671_s29 = scalar_lea.vmem %s1263_s26, 2048  ;;  %p1676_p11 = scmp.lt.s32.totalorder %s1263_s26, %s1263_s26 }
  0x64   :  { %972 = vmatpush1.bf16.msra.mxu1 %v1535_v23  ;;  %p1672_p10 = scmp.ne.s32.totalorder %s1263_s26, %s1671_s29  ;;  %p1677_p12 = scmp.lt.s32.totalorder %s1671_s29, %s1671_s29 }
  0x65   :  { %534 = vmatpush1.bf16.msra.mxu0 %v1448_v26  ;;  %v1479_v26 = vld [vmem:[#allocation5 + $0x160] ss:$8 sps:$4 sm:$0xff]   ;;  %973 = vmatprep.subr.bf16.mxu1 %v1536_v25 }
  0x66   :  { %535 = vmatprep.subr.bf16.mxu0 %v1449_v27  ;;  %v95_v27 = vpack.c.bf16 %v67_v22, %v63_v21  ;;  %p1678_p13 = por %p1677_p12, %p1676_p11 }
  0x68   :  { %p1679_p0 = pnand %p1678_p13, %p1672_p10 }
  0x69   :  { %536 = vmatpush1.bf16.msra.mxu0 %v1451_v28  ;;  %v1484_v28 = vld [vmem:[#allocation5 + $0x174] ss:$8 sps:$4 sm:$0xff]  }
  0x6a   :  { %537 = vmatprep.subr.bf16.mxu0 %v1452_v29  ;;  %v1538_v29 = vld [vmem:[#allocation7 + $0x90] ss:$8 sps:$4 sm:$0xff]  }
  0x6b   :  { %974 = vmatpush1.bf16.msra.mxu1 %v1538_v29 }
  0x6c   :  { %975 = vmatprep.subr.bf16.mxu1 %v1539_v4 }
  0x6d   :  { %538 = vmatpush1.bf16.msra.mxu0 %v1454_v30  ;;  %v1482_v30 = vld [vmem:[#allocation5 + $0x170] ss:$8 sps:$4 sm:$0xff]  }
  0x6e   :  { %539 = vmatprep.subr.bf16.mxu0 %v1455_v31  ;;  %v1487_v31 = vld [vmem:[#allocation5 + $0x184] ss:$8 sps:$4 sm:$0xff]  }
  0x6f   :  { %976 = vmatpush1.bf16.msra.mxu1 %v1541_v5 }
  0x71   :  { %540 = vmatpush1.bf16.msra.mxu0 %v1457_v34  ;;  %v1488_v34 = vld [vmem:[#allocation5 + $0x190] ss:$8 sps:$4 sm:$0xff]  }
  0x72   :  { %541 = vmatprep.subr.bf16.mxu0 %v1458_v36  ;;  %v1491_v36 = vld [vmem:[#allocation5 + $0x1a0] ss:$8 sps:$4 sm:$0xff]  }
  0x75   :  { %542 = vmatpush1.bf16.msra.mxu0 %v1460_v37  ;;  %v1496_v37 = vld [vmem:[#allocation5 + $0x1b4] ss:$8 sps:$4 sm:$0xff]  }
  0x76   :  { %584 = vmatprep.subr.bf16.mxu0 %v1463_v39  ;;  %v1499_v39 = vld [vmem:[#allocation5 + $0x1c4] ss:$8 sps:$4 sm:$0xff]  }
  0x78   :  { %544 = vmatmul.mubr.bf16.vlgmr.msra.gmra.mrb[0].mxu0 %v92_v46  ;;  %v1506_v46 = vld [vmem:[#allocation5 + $0x1f0] ss:$8 sps:$4 sm:$0xff]  }
  0x79   :  { %585 = vmatpush1.bf16.msra.mxu0 %v1461_v48  ;;  %553 = vmatprep.mubr.bf16.mxu0 %v97_v49  ;;  %v66_v48 = vld [vmem:[#allocation2 + $0x30] sm:$0xff]  ;;  %v71_v49 = vld [vmem:[#allocation2 + $0x58] sm:$0xff] }
  0x7a   :  { %586 = vmatprep.subr.bf16.mxu0 %v1466_v50  ;;  %v75_v50 = vld [vmem:[#allocation2 + $0x78] sm:$0xff] }
  0x7b   :  { %v99_v52 = vpack.c.bf16 %v75_v50, %v71_v49 }
  0x7d   :  { %587 = vmatpush1.bf16.msra.mxu0 %v1464_v51  ;;  %v94_v51 = vpack.c.bf16 %v66_v48, %v62_v47 }
  0x7e   :  { %588 = vmatprep.subr.bf16.mxu0 %v1469_v55  ;;  %v79_v55 = vld [vmem:[#allocation2 + $0x98] sm:$0xff] }
  0x7f   :  { %v103_v58 = vpack.c.bf16 %v83_v56, %v79_v55 }
  0x80   :  { %554 = vmatmul.mubr.bf16.gmra.mrb[4].mxu0 %v96_v61  ;;  %v87_v61 = vld [vmem:[#allocation2 + $0xd8] sm:$0xff] }
  0x81   :  { %589 = vmatpush1.bf16.msra.mxu0 %v1467_v62  ;;  %563 = vmatprep.mubr.bf16.mxu0 %v101_v63  ;;  %v91_v62 = vld [vmem:[#allocation2 + $0xf8] sm:$0xff]  ;;  %v102_v63 = vpack.c.bf16 %v82_v60, %v78_v59 }
  0x82   :  { %590 = vmatprep.subr.bf16.mxu0 %v1472_v0  ;;  %v107_v0 = vpack.c.bf16 %v91_v62, %v87_v61 }
  0x85   :  { %591 = vmatpush1.bf16.msra.mxu0 %v1470_v3  ;;  %v106_v3 = vpack.c.bf16 %v90_v2, %v86_v1 }
  0x86   :  { %592 = vmatprep.subr.bf16.mxu0 %v1475_v6  ;;  %v1542_v6 = vld [vmem:[#allocation7 + $0xb4] ss:$8 sps:$4 sm:$0xff]  }
  0x87   :  { %977 = vmatprep.subr.bf16.mxu1 %v1542_v6 }
  0x88   :  { %564 = vmatmul.mubr.bf16.gmra.mrb[8].mxu0 %v100_v10  ;;  %978 = vmatpush1.bf16.msra.mxu1 %v1544_v7  ;;  %v1548_v10 = vld [vmem:[#allocation7 + $0xd4] ss:$8 sps:$4 sm:$0xff]  }
  0x89   :  { %593 = vmatpush1.bf16.msra.mxu0 %v1473_v12  ;;  %573 = vmatprep.mubr.bf16.mxu0 %v105_v13  ;;  %v1551_v12 = vld [vmem:[#allocation7 + $0xe4] ss:$8 sps:$4 sm:$0xff]   ;;  %v1553_v13 = vld [vmem:[#allocation7 + $0xe0] ss:$8 sps:$4 sm:$0xff]  }
  0x8a   :  { %594 = vmatprep.subr.bf16.mxu0 %v1478_v14  ;;  %979 = vmatprep.subr.bf16.mxu1 %v1545_v8  ;;  %v1554_v14 = vld [vmem:[#allocation7 + $0xf4] ss:$8 sps:$4 sm:$0xff]  }
  0x8c   :  { %980 = vmatpush1.bf16.msra.mxu1 %v1547_v9 }
  0x8d   :  { %595 = vmatpush1.bf16.msra.mxu0 %v1476_v17  ;;  %981 = vmatprep.subr.bf16.mxu1 %v1548_v10  ;;  %v1776_v17 = vshrl.u32 %v173_v16, 7 }
  0x8e   :  { %596 = vmatprep.subr.bf16.mxu0 %v1481_v20 }
  0x8f   :  { %v175_v18 = vsub.s32 0, %v1776_v17  ;;  %v179_v20 = vsub.s32 4, %v1776_v17 }
  0x90   :  { %574 = vmatmul.mubr.bf16.gmra.mrb[12].mxu0 %v104_v24  ;;  %982 = vmatpush1.bf16.msra.mxu1 %v1550_v11 }
  0x91   :  { %597 = vmatpush1.bf16.msra.mxu0 %v1479_v26  ;;  %616 = vmatprep.mubr.bf16.mxu0 %v95_v27  ;;  %v176_v21 = vrot.slane %v1782_v19, %v175_v18  ;;  %v180_v22 = vrot.slane %v1782_v19, %v179_v20 }
  0x92   :  { %598 = vmatprep.subr.bf16.mxu0 %v1484_v28  ;;  %983 = vmatprep.subr.bf16.mxu1 %v1551_v12 }
  0x93   :  { %v1787_v23 = vrot.slane %v176_v21, %v175_v18  ;;  %v1789_v24 = vrot.slane %v180_v22, %v175_v18 }
  0x94   :  { %984 = vmatpush1.bf16.msra.mxu1 %v1553_v13 }
  0x95   :  { %599 = vmatpush1.bf16.msra.mxu0 %v1482_v30  ;;  %985 = vmatprep.subr.bf16.mxu1 %v1554_v14 }
  0x96   :  { %600 = vmatprep.subr.bf16.mxu0 %v1487_v31 }
  0x98   :  { %986 = vmatpush1.bf16.msra.mxu1 %v1556_v15 }
  0x99   :  { %601 = vmatpush1.bf16.msra.mxu0 %v1485_v32 }
  0x9a   :  { %602 = vmatprep.subr.bf16.mxu0 %v1490_v33 }
  0x9d   :  { %603 = vmatpush1.bf16.msra.mxu0 %v1488_v34 }
  0x9e   :  { %604 = vmatprep.subr.bf16.mxu0 %v1493_v35 }
  0xa1   :  { %605 = vmatpush1.bf16.msra.mxu0 %v1491_v36 }
  0xa2   :  { %606 = vmatprep.subr.bf16.mxu0 %v1496_v37 }
  0xa5   :  { %607 = vmatpush1.bf16.msra.mxu0 %v1494_v38 }
  0xa6   :  { %608 = vmatprep.subr.bf16.mxu0 %v1499_v39 }
  0xa9   :  { %609 = vmatpush1.bf16.msra.mxu0 %v1497_v40 }
  0xaa   :  { %610 = vmatprep.subr.bf16.mxu0 %v1502_v41 }
  0xad   :  { %611 = vmatpush1.bf16.msra.mxu0 %v1500_v42 }
  0xae   :  { %612 = vmatprep.subr.bf16.mxu0 %v1505_v43 }
  0xb1   :  { %613 = vmatpush1.bf16.msra.mxu0 %v1503_v44 }
  0xb2   :  { %614 = vmatprep.subr.bf16.mxu0 %v1508_v45 }
  0xb5   :  { %615 = vmatpush1.bf16.msra.mxu0 %v1506_v46 }
  0xb8   :  { %617 = vmatmul.mubr.bf16.vlgmr.msra.gmra.mrb[0].mxu0 %v94_v51 }
  0xb9   :  { %626 = vmatprep.mubr.bf16.mxu0 %v99_v52 }
  0xc0   :  { %627 = vmatmul.mubr.bf16.gmra.mrb[4].mxu0 %v98_v57 }
  0xc1   :  { %636 = vmatprep.mubr.bf16.mxu0 %v103_v58 }
  0xc8   :  { %637 = vmatmul.mubr.bf16.gmra.mrb[8].mxu0 %v102_v63 }
  0xc9   :  { %646 = vmatprep.mubr.bf16.mxu0 %v107_v0 }
  0xd0   :  { %647 = vmatmul.mubr.bf16.gmra.mrb[12].mxu0 %v106_v3 }
 0x18b   :  { %v618_v25 = vpop.f32.mrb[0].mxu0 }
 0x18c   :  { %v1792_v26 = vadd.f32 %v618_v25, %v1787_v23  ;;  %v620_v27 = vpop.f32.mrb[1].mxu0 }
 0x18d   :  { %v1795_v28 = vadd.f32 %v620_v27, %v1789_v24  ;;  %v622_v29 = vpop.f32.mrb[2].mxu0 }
 0x18e   :  { %v673_v30 = vmul.f32 0.70710677, %v1792_v26  ;;  %v1799_v31 = vadd.f32 %v622_v29, %v1787_v23  ;;  %v624_v32 = vpop.f32.mrb[3].mxu0  ;;  %v657_v3 = vmul.f32 0.5, %v1792_v26 }
 0x18f   :  { %v674_v33 = vmul.f32 0.70710677, %v1795_v28  ;;  %v1803_v34 = vadd.f32 %v624_v32, %v1789_v24  ;;  %v658_v59 = vmul.f32 0.5, %v1795_v28 }
 0x190   :  { %1557 = verf.f32 %v673_v30  ;;  %v675_v35 = vmul.f32 0.70710677, %v1799_v31  ;;  %v659_v4 = vmul.f32 0.5, %v1799_v31 }
 0x191   :  { %1559 = verf.f32 %v674_v33  ;;  %v676_v36 = vmul.f32 0.70710677, %v1803_v34  ;;  %v660_v1 = vmul.f32 0.5, %v1803_v34 }
 0x192   :  { %1561 = verf.f32 %v675_v35 }
 0x193   :  { %1563 = verf.f32 %v676_v36  ;;  %v628_v37 = vpop.f32.mrb[4].mxu0 }
 0x194   :  { %v1808_v38 = vadd.f32 %v628_v37, %v1787_v23  ;;  %v630_v39 = vpop.f32.mrb[5].mxu0 }
 0x195   :  { %v1811_v40 = vadd.f32 %v630_v39, %v1789_v24  ;;  %v632_v41 = vpop.f32.mrb[6].mxu0 }
 0x196   :  { %v677_v42 = vmul.f32 0.70710677, %v1808_v38  ;;  %v1815_v43 = vadd.f32 %v632_v41, %v1787_v23  ;;  %v634_v44 = vpop.f32.mrb[7].mxu0 }
 0x197   :  { %v678_v45 = vmul.f32 0.70710677, %v1811_v40  ;;  %v1819_v46 = vadd.f32 %v634_v44, %v1789_v24  ;;  %v662_v29 = vmul.f32 0.5, %v1811_v40  ;;  %v661_v44 = vmul.f32 0.5, %v1808_v38 }
 0x198   :  { %1565 = verf.f32 %v677_v42  ;;  %v679_v47 = vmul.f32 0.70710677, %v1815_v43 }
 0x199   :  { %1567 = verf.f32 %v678_v45  ;;  %v680_v48 = vmul.f32 0.70710677, %v1819_v46  ;;  %v664_v36 = vmul.f32 0.5, %v1819_v46  ;;  %v663_v45 = vmul.f32 0.5, %v1815_v43 }
 0x19a   :  { %v1558_v49 = vpop.eup %1557  ;;  %1569 = verf.f32 %v679_v47 }
 0x19b   :  { %v1560_v50 = vpop.eup %1559  ;;  %1571 = verf.f32 %v680_v48  ;;  %v638_v51 = vpop.f32.mrb[8].mxu0  ;;  %v705_v60 = vadd.f32 1.0, %v1558_v49 }
 0x19c   :  { %v1562_v52 = vpop.eup %1561  ;;  %v1824_v53 = vadd.f32 %v638_v51, %v1787_v23  ;;  %v640_v54 = vpop.f32.mrb[9].mxu0  ;;  %v706_v55 = vadd.f32 1.0, %v1560_v50 }
 0x19d   :  { %v1564_v56 = vpop.eup %1563  ;;  %v1827_v57 = vadd.f32 %v640_v54, %v1789_v24  ;;  %v642_v58 = vpop.f32.mrb[10].mxu0  ;;  %v707_v61 = vadd.f32 1.0, %v1562_v52  ;;  %v721_v11 = vmul.f32 %v705_v60, %v657_v3 }
 0x19e   :  { %v681_v62 = vmul.f32 0.70710677, %v1824_v53  ;;  %v1832_v63 = vadd.f32 %v642_v58, %v1787_v23  ;;  %v644_v0 = vpop.f32.mrb[11].mxu0  ;;  %v708_v2 = vadd.f32 1.0, %v1564_v56  ;;  %v722_v8 = vmul.f32 %v706_v55, %v658_v59 }
 0x19f   :  { %v682_v5 = vmul.f32 0.70710677, %v1827_v57  ;;  %v1839_v6 = vadd.f32 %v644_v0, %v1789_v24  ;;  %v723_v12 = vmul.f32 %v707_v61, %v659_v4 }
 0x1a0   :  { %1573 = verf.f32 %v681_v62  ;;  %v683_v7 = vmul.f32 0.70710677, %v1832_v63  ;;  %v724_v9 = vmul.f32 %v708_v2, %v660_v1  ;;  %v667_v62 = vmul.f32 0.5, %v1832_v63 }
 0x1a1   :  { %1575 = verf.f32 %v682_v5  ;;  %v684_v10 = vmul.f32 0.70710677, %v1839_v6  ;;  %v737_v18 = vpack.c.bf16 %v723_v12, %v721_v11  ;;  %v666_v2 = vmul.f32 0.5, %v1827_v57 }
 0x1a2   :  { %v1566_v13 = vpop.eup %1565  ;;  %1577 = verf.f32 %v683_v7  ;;  %v738_v14 = vpack.c.bf16 %v724_v9, %v722_v8  ;;  %v668_v3 = vmul.f32 0.5, %v1839_v6  ;;  %v665_v5 = vmul.f32 0.5, %v1824_v53 }
 0x1a3   :  { %v1568_v15 = vpop.eup %1567  ;;  %1579 = verf.f32 %v684_v10  ;;  %v648_v16 = vpop.f32.mrb[12].mxu0  ;;  %v709_v33 = vadd.f32 1.0, %v1566_v13 }
 0x1a4   :  { %v1570_v20 = vpop.eup %1569  ;;  %v1844_v21 = vadd.f32 %v648_v16, %v1787_v23  ;;  %v650_v22 = vpop.f32.mrb[13].mxu0  ;;  %987 = vmatprep.mubr.bf16.mxu1 %v738_v14  ;;  %v710_v25 = vadd.f32 1.0, %v1568_v15 }
 0x1a5   :  { %v1572_v27 = vpop.eup %1571  ;;  %v1848_v30 = vadd.f32 %v650_v22, %v1789_v24  ;;  %v652_v32 = vpop.f32.mrb[14].mxu0  ;;  %988 = vmatmul.mubr.bf16.vlgmr.msra.gmra.mrb[0].mxu1 %v737_v18  ;;  %v711_v35 = vadd.f32 1.0, %v1570_v20  ;;  %v725_v52 = vmul.f32 %v709_v33, %v661_v44 }
 0x1a6   :  { %v685_v37 = vmul.f32 0.70710677, %v1844_v21  ;;  %v1853_v39 = vadd.f32 %v652_v32, %v1787_v23  ;;  %v654_v41 = vpop.f32.mrb[15].mxu0  ;;  %v712_v42 = vadd.f32 1.0, %v1572_v27  ;;  %v726_v50 = vmul.f32 %v710_v25, %v662_v29 }
 0x1a7   :  { %v686_v47 = vmul.f32 0.70710677, %v1848_v30  ;;  %v1859_v48 = vadd.f32 %v654_v41, %v1789_v24  ;;  %v727_v54 = vmul.f32 %v711_v35, %v663_v45  ;;  %v670_v27 = vmul.f32 0.5, %v1848_v30 }
 0x1a8   :  { %1581 = verf.f32 %v685_v37  ;;  %v687_v49 = vmul.f32 0.70710677, %v1853_v39  ;;  %v728_v51 = vmul.f32 %v712_v42, %v664_v36  ;;  %v671_v20 = vmul.f32 0.5, %v1853_v39 }
 0x1a9   :  { %1583 = verf.f32 %v686_v47  ;;  %v688_v23 = vmul.f32 0.70710677, %v1859_v48  ;;  %v739_v59 = vpack.c.bf16 %v727_v54, %v725_v52  ;;  %v672_v29 = vmul.f32 0.5, %v1859_v48 }
 0x1aa   :  { %v1574_v55 = vpop.eup %1573  ;;  %1585 = verf.f32 %v687_v49  ;;  %v740_v56 = vpack.c.bf16 %v728_v51, %v726_v50  ;;  %v669_v33 = vmul.f32 0.5, %v1844_v21  ;;  %v779_v45 = vsub.s32 1, %v1776_v17 }
 0x1ab   :  { %v1576_v58 = vpop.eup %1575  ;;  %1587 = verf.f32 %v688_v23  ;;  %v713_v0 = vadd.f32 1.0, %v1574_v55  ;;  %v783_v47 = vsub.s32 5, %v1776_v17 }
 0x1ac   :  { %v1578_v60 = vpop.eup %1577  ;;  %997 = vmatprep.mubr.bf16.mxu1 %v740_v56  ;;  %v714_v24 = vadd.f32 1.0, %v1576_v58  ;;  %v780_v49 = vrot.slane %v1782_v19, %v779_v45 }
 0x1ad   :  { %v1580_v61 = vpop.eup %1579  ;;  %998 = vmatmul.mubr.bf16.gmra.mrb[4].mxu1 %v739_v59  ;;  %v715_v1 = vadd.f32 1.0, %v1578_v60  ;;  %v729_v10 = vmul.f32 %v713_v0, %v665_v5  ;;  %v784_v50 = vrot.slane %v1782_v19, %v783_v47 }
 0x1ae   :  { %v716_v4 = vadd.f32 1.0, %v1580_v61  ;;  %v730_v8 = vmul.f32 %v714_v24, %v666_v2  ;;  %v790_v51 = vrot.slane %v780_v49, %v779_v45 }
 0x1af   :  { %v731_v7 = vmul.f32 %v715_v1, %v667_v62  ;;  %v794_v23 = vrot.slane %v784_v50, %v779_v45 }
 0x1b0   :  { %v732_v9 = vmul.f32 %v716_v4, %v668_v3 }
 0x1b1   :  { %v741_v14 = vpack.c.bf16 %v731_v7, %v729_v10 }
 0x1b2   :  { %v1582_v11 = vpop.eup %1581  ;;  %v742_v12 = vpack.c.bf16 %v732_v9, %v730_v8 }
 0x1b3   :  { %v1584_v13 = vpop.eup %1583  ;;  %v717_v22 = vadd.f32 1.0, %v1582_v11 }
 0x1b4   :  { %v1586_v15 = vpop.eup %1585  ;;  %1007 = vmatprep.mubr.bf16.mxu1 %v742_v12  ;;  %v718_v16 = vadd.f32 1.0, %v1584_v13 }
 0x1b5   :  { %v1588_v18 = vpop.eup %1587  ;;  %1008 = vmatmul.mubr.bf16.gmra.mrb[8].mxu1 %v741_v14  ;;  %v719_v25 = vadd.f32 1.0, %v1586_v15  ;;  %v733_v41 = vmul.f32 %v717_v22, %v669_v33 }
 0x1b6   :  { %v720_v32 = vadd.f32 1.0, %v1588_v18  ;;  %v734_v36 = vmul.f32 %v718_v16, %v670_v27 }
 0x1b7   :  { %v735_v35 = vmul.f32 %v719_v25, %v671_v20 }
 0x1b8   :  { %v736_v37 = vmul.f32 %v720_v32, %v672_v29 }
 0x1b9   :  { %v743_v44 = vpack.c.bf16 %v735_v35, %v733_v41 }
 0x1ba   :  { %v744_v42 = vpack.c.bf16 %v736_v37, %v734_v36 }
 0x1bc   :  { %1017 = vmatprep.mubr.bf16.mxu1 %v744_v42 }
 0x1bd   :  { %1018 = vmatmul.mubr.bf16.gmra.mrb[12].mxu1 %v743_v44 }
 0x278   :  { %v989_v52 = vpop.f32.mrb[0].mxu1 }
 0x279   :  { %v990_v54 = vadd.f32 %v989_v52, %v790_v51  ;;  %v991_v55 = vpop.f32.mrb[1].mxu1 }
 0x27a   :  { %v992_v56 = vadd.f32 %v991_v55, %v794_v23  ;;  %v993_v58 = vpop.f32.mrb[2].mxu1 }
 0x27b   :  { %v994_v59 = vadd.f32 %v993_v58, %v790_v51  ;;  %v995_v60 = vpop.f32.mrb[3].mxu1  ;;  %v1028_v24 = vadd.f32 %v1792_v26, %v990_v54 }
 0x27c   :  { %v996_v61 = vadd.f32 %v995_v60, %v794_v23  ;;  %v1029_v62 = vadd.f32 %v1795_v28, %v992_v56 }
 0x27d   :  { %v1030_v0 = vadd.f32 %v1799_v31, %v994_v59 }
 0x27e   :  { %v1031_v1 = vadd.f32 %v1803_v34, %v996_v61  ;;  %v1044_v2 = vadd.f32 %v1029_v62, %v1028_v24 }
 0x280   :  { %v999_v3 = vpop.f32.mrb[4].mxu1  ;;  %1045 = vadd.xlane.f32.xlu0 %v1044_v2  ;;  %v1047_v9 = vadd.f32 %v1031_v1, %v1030_v0 }
 0x281   :  { %v1000_v4 = vadd.f32 %v999_v3, %v790_v51  ;;  %v1001_v5 = vpop.f32.mrb[5].mxu1 }
 0x282   :  { %v1002_v7 = vadd.f32 %v1001_v5, %v794_v23  ;;  %v1003_v8 = vpop.f32.mrb[6].mxu1 }
 0x283   :  { %v1004_v10 = vadd.f32 %v1003_v8, %v790_v51  ;;  %v1005_v11 = vpop.f32.mrb[7].mxu1  ;;  %v1032_v12 = vadd.f32 %v1808_v38, %v1000_v4 }
 0x284   :  { %v1006_v26 = vadd.f32 %v1005_v11, %v794_v23  ;;  %1048 = vadd.xlane.f32.xlu0 %v1047_v9  ;;  %v1033_v28 = vadd.f32 %v1811_v40, %v1002_v7 }
 0x285   :  { %v1034_v31 = vadd.f32 %v1815_v43, %v1004_v10 }
 0x286   :  { %v1035_v34 = vadd.f32 %v1819_v46, %v1006_v26  ;;  %v1050_v13 = vadd.f32 %v1033_v28, %v1032_v12 }
 0x288   :  { %v1009_v14 = vpop.f32.mrb[8].mxu1  ;;  %1051 = vadd.xlane.f32.xlu1 %v1050_v13  ;;  %v1053_v22 = vadd.f32 %v1035_v34, %v1034_v31 }
 0x289   :  { %v1010_v15 = vadd.f32 %v1009_v14, %v790_v51  ;;  %v1011_v16 = vpop.f32.mrb[9].mxu1 }
 0x28a   :  { %v1012_v18 = vadd.f32 %v1011_v16, %v794_v23  ;;  %v1013_v20 = vpop.f32.mrb[10].mxu1 }
 0x28b   :  { %v1036_v25 = vadd.f32 %v1824_v53, %v1010_v15  ;;  %v1014_v27 = vadd.f32 %v1013_v20, %v790_v51  ;;  %v1015_v38 = vpop.f32.mrb[11].mxu1 }
 0x28c   :  { %v1037_v29 = vadd.f32 %v1827_v57, %v1012_v18  ;;  %v1016_v32 = vadd.f32 %v1015_v38, %v794_v23  ;;  %1054 = vadd.xlane.f32.xlu1 %v1053_v22 }
 0x28d   :  { %v1038_v40 = vadd.f32 %v1832_v63, %v1014_v27 }
 0x28e   :  { %v1039_v43 = vadd.f32 %v1839_v6, %v1016_v32  ;;  %v1056_v46 = vadd.f32 %v1037_v29, %v1036_v25 }
 0x290   :  { %v1019_v33 = vpop.f32.mrb[12].mxu1  ;;  %1057 = vadd.xlane.f32.xlu0 %v1056_v46  ;;  %v1059_v35 = vadd.f32 %v1039_v43, %v1038_v40 }
 0x291   :  { %v1020_v36 = vadd.f32 %v1019_v33, %v790_v51  ;;  %v1021_v37 = vpop.f32.mrb[13].mxu1 }
 0x292   :  { %v1022_v41 = vadd.f32 %v1021_v37, %v794_v23  ;;  %v1023_v42 = vpop.f32.mrb[14].mxu1  ;;  %1060 = vadd.xlane.f32.xlu1 %v1059_v35 }
 0x293   :  { %v1040_v53 = vadd.f32 %v1844_v21, %v1020_v36  ;;  %v1024_v44 = vadd.f32 %v1023_v42, %v790_v51  ;;  %v1025_v45 = vpop.f32.mrb[15].mxu1 }
 0x294   :  { %v1041_v57 = vadd.f32 %v1848_v30, %v1022_v41  ;;  %v1026_v47 = vadd.f32 %v1025_v45, %v794_v23 }
 0x295   :  { %v1042_v63 = vadd.f32 %v1853_v39, %v1024_v44 }
 0x296   :  { %v1043_v6 = vadd.f32 %v1859_v48, %v1026_v47  ;;  %v1062_v49 = vadd.f32 %v1041_v57, %v1040_v53 }
 0x298   :  { %1063 = vadd.xlane.f32.xlu0 %v1062_v49  ;;  %v1065_v50 = vadd.f32 %v1043_v6, %v1042_v63 }
 0x29a   :  { %1066 = vadd.xlane.f32.xlu1 %v1065_v50  ;;  %v1175_v50 = vsub.s32 2, %v1776_v17 }
 0x30d   :  { %v1046_v52 = vpop.xlane.xlu0 %1045 }
 0x30e   :  { %v1069_v54 = vmul.f32 0.00390625, %v1046_v52  ;;  %v1179_v52 = vsub.s32 6, %v1776_v17 }
 0x310   :  { %v1891_v55 = vsub.f32 %v1028_v24, %v1069_v54  ;;  %v1893_v56 = vsub.f32 %v1029_v62, %v1069_v54 }
 0x311   :  { %v1049_v21 = vpop.xlane.xlu0 %1048 }
 0x312   :  { %v1070_v51 = vmul.f32 0.00390625, %v1049_v21  ;;  %v1093_v30 = vmul.f32 %v1891_v55, %v1891_v55  ;;  %v1094_v39 = vmul.f32 %v1893_v56, %v1893_v56  ;;  %v1209_v21 = vsub.s32 3, %v1776_v17 }
 0x314   :  { %v1899_v23 = vsub.f32 %v1030_v0, %v1070_v51  ;;  %v1901_v48 = vsub.f32 %v1031_v1, %v1070_v51  ;;  %v1109_v58 = vadd.f32 %v1094_v39, %v1093_v30  ;;  %v1213_v51 = vsub.s32 7, %v1776_v17 }
 0x315   :  { %v1052_v59 = vpop.xlane.xlu1 %1051 }
 0x316   :  { %v1071_v60 = vmul.f32 0.00390625, %v1052_v59  ;;  %1110 = vadd.xlane.f32.xlu0 %v1109_v58  ;;  %v1095_v24 = vmul.f32 %v1899_v23, %v1899_v23  ;;  %v1096_v61 = vmul.f32 %v1901_v48, %v1901_v48  ;;  %v1176_v58 = vrot.slane %v1782_v19, %v1175_v50 }
 0x317   :  { %v1180_v59 = vrot.slane %v1782_v19, %v1179_v52 }
 0x318   :  { %v1907_v62 = vsub.f32 %v1032_v12, %v1071_v60  ;;  %v1909_v2 = vsub.f32 %v1033_v28, %v1071_v60  ;;  %v1112_v3 = vadd.f32 %v1096_v61, %v1095_v24  ;;  %v1210_v24 = vrot.slane %v1782_v19, %v1209_v21 }
 0x319   :  { %v1055_v4 = vpop.xlane.xlu1 %1054  ;;  %v1214_v61 = vrot.slane %v1782_v19, %v1213_v51 }
 0x31a   :  { %v1072_v0 = vmul.f32 0.00390625, %v1055_v4  ;;  %1113 = vadd.xlane.f32.xlu1 %v1112_v3  ;;  %v1097_v1 = vmul.f32 %v1907_v62, %v1907_v62  ;;  %v1098_v5 = vmul.f32 %v1909_v2, %v1909_v2 }
 0x31c   :  { %v1915_v7 = vsub.f32 %v1034_v31, %v1072_v0  ;;  %v1917_v8 = vsub.f32 %v1035_v34, %v1072_v0  ;;  %v1115_v9 = vadd.f32 %v1098_v5, %v1097_v1  ;;  %v1963_v0 = vrot.slane %v1176_v58, %v1175_v50 }
 0x31d   :  { %v1058_v10 = vpop.xlane.xlu0 %1057  ;;  %v1965_v1 = vrot.slane %v1180_v59, %v1175_v50 }
 0x31e   :  { %v1073_v11 = vmul.f32 0.00390625, %v1058_v10  ;;  %1116 = vadd.xlane.f32.xlu0 %v1115_v9  ;;  %v1099_v12 = vmul.f32 %v1915_v7, %v1915_v7  ;;  %v1100_v26 = vmul.f32 %v1917_v8, %v1917_v8  ;;  %v1967_v9 = vrot.slane %v1210_v24, %v1209_v21 }
 0x31f   :  { %v1061_v28 = vpop.xlane.xlu1 %1060  ;;  %v1969_v10 = vrot.slane %v1214_v61, %v1209_v21 }
 0x320   :  { %v1923_v13 = vsub.f32 %v1036_v25, %v1073_v11  ;;  %v1925_v14 = vsub.f32 %v1037_v29, %v1073_v11  ;;  %v1074_v15 = vmul.f32 0.00390625, %v1061_v28  ;;  %v1118_v31 = vadd.f32 %v1100_v26, %v1099_v12 }
 0x322   :  { %v1927_v16 = vsub.f32 %v1038_v40, %v1074_v15  ;;  %v1929_v34 = vsub.f32 %v1039_v43, %v1074_v15  ;;  %1119 = vadd.xlane.f32.xlu1 %v1118_v31  ;;  %v1101_v18 = vmul.f32 %v1923_v13, %v1923_v13  ;;  %v1102_v20 = vmul.f32 %v1925_v14, %v1925_v14 }
 0x324   :  { %v1121_v22 = vadd.f32 %v1102_v20, %v1101_v18  ;;  %v1103_v25 = vmul.f32 %v1927_v16, %v1927_v16  ;;  %v1104_v27 = vmul.f32 %v1929_v34, %v1929_v34 }
 0x325   :  { %v1064_v38 = vpop.xlane.xlu0 %1063 }
 0x326   :  { %v1075_v29 = vmul.f32 0.00390625, %v1064_v38  ;;  %1122 = vadd.xlane.f32.xlu0 %v1121_v22  ;;  %v1124_v32 = vadd.f32 %v1104_v27, %v1103_v25 }
 0x327   :  { %v1067_v40 = vpop.xlane.xlu1 %1066 }
 0x328   :  { %v1939_v43 = vsub.f32 %v1040_v53, %v1075_v29  ;;  %v1941_v46 = vsub.f32 %v1041_v57, %v1075_v29  ;;  %v1076_v33 = vmul.f32 0.00390625, %v1067_v40  ;;  %1125 = vadd.xlane.f32.xlu1 %v1124_v32 }
 0x32a   :  { %v1943_v35 = vsub.f32 %v1042_v63, %v1076_v33  ;;  %v1945_v36 = vsub.f32 %v1043_v6, %v1076_v33  ;;  %v1105_v37 = vmul.f32 %v1939_v43, %v1939_v43  ;;  %v1106_v41 = vmul.f32 %v1941_v46, %v1941_v46 }
 0x32c   :  { %v1127_v42 = vadd.f32 %v1106_v41, %v1105_v37  ;;  %v1107_v44 = vmul.f32 %v1943_v35, %v1943_v35  ;;  %v1108_v53 = vmul.f32 %v1945_v36, %v1945_v36 }
 0x32e   :  { %1128 = vadd.xlane.f32.xlu0 %v1127_v42  ;;  %v1130_v45 = vadd.f32 %v1108_v53, %v1107_v44 }
 0x330   :  { %1131 = vadd.xlane.f32.xlu1 %v1130_v45 }
 0x3a3   :  { %v1111_v57 = vpop.xlane.xlu0 %1110 }
 0x3a4   :  { %v1133_v47 = vmul.f32 0.00390625, %v1111_v57 }
 0x3a6   :  { %v1141_v63 = vadd.f32 1e-05, %v1133_v47 }
 0x3a7   :  { %v1114_v6 = vpop.xlane.xlu1 %1113 }
 0x3a8   :  { %1589 = vrsqrt.f32 %v1141_v63  ;;  %v1134_v49 = vmul.f32 0.00390625, %v1114_v6 }
 0x3aa   :  { %v1142_v54 = vadd.f32 1e-05, %v1134_v49 }
 0x3ab   :  { %v1117_v30 = vpop.xlane.xlu0 %1116 }
 0x3ac   :  { %1591 = vrsqrt.f32 %v1142_v54  ;;  %v1135_v39 = vmul.f32 0.00390625, %v1117_v30 }
 0x3ae   :  { %v1143_v60 = vadd.f32 1e-05, %v1135_v39 }
 0x3af   :  { %v1120_v3 = vpop.xlane.xlu1 %1119 }
 0x3b0   :  { %1593 = vrsqrt.f32 %v1143_v60  ;;  %v1136_v4 = vmul.f32 0.00390625, %v1120_v3 }
 0x3b2   :  { %v1590_v17 = vpop.eup %1589  ;;  %v1144_v5 = vadd.f32 1e-05, %v1136_v4 }
 0x3b3   :  { %v1157_v11 = vmul.f32 %v1590_v17, %v1891_v55  ;;  %v1158_v12 = vmul.f32 %v1590_v17, %v1893_v56  ;;  %v1123_v26 = vpop.xlane.xlu0 %1122 }
 0x3b4   :  { %1595 = vrsqrt.f32 %v1144_v5  ;;  %v1137_v19 = vmul.f32 0.00390625, %v1123_v26 }
 0x3b5   :  { %v1191_v28 = vmul.f32 %v1963_v0, %v1157_v11  ;;  %v1192_v15 = vmul.f32 %v1965_v1, %v1158_v12  ;;  %v1126_v31 = vpop.xlane.xlu1 %1125 }
 0x3b6   :  { %v1592_v18 = vpop.eup %1591  ;;  %v1145_v20 = vadd.f32 1e-05, %v1137_v19  ;;  %v1138_v22 = vmul.f32 0.00390625, %v1126_v31 }
 0x3b7   :  { %v1225_v25 = vadd.f32 %v1967_v9, %v1191_v28  ;;  %v1226_v27 = vadd.f32 %v1969_v10, %v1192_v15  ;;  %v1159_v38 = vmul.f32 %v1592_v18, %v1899_v23  ;;  %v1160_v55 = vmul.f32 %v1592_v18, %v1901_v48 }
 0x3b8   :  { %1597 = vrsqrt.f32 %v1145_v20  ;;  %v1146_v56 = vadd.f32 1e-05, %v1138_v22 }
 0x3b9   :  { %1241 = vst [vmem:[#allocation8] sm:$0xff] %v1225_v25  ;;  %1242 = vst [vmem:[#allocation8 + $0x8] sm:$0xff] %v1226_v27  ;;  %v1193_v29 = vmul.f32 %v1963_v0, %v1159_v38  ;;  %v1194_v32 = vmul.f32 %v1965_v1, %v1160_v55 }
 0x3ba   :  { %v1594_v40 = vpop.eup %1593  ;;  %1599 = vrsqrt.f32 %v1146_v56 }
 0x3bb   :  { %v1227_v33 = vadd.f32 %v1967_v9, %v1193_v29  ;;  %v1228_v37 = vadd.f32 %v1969_v10, %v1194_v32  ;;  %v1161_v41 = vmul.f32 %v1594_v40, %v1907_v62  ;;  %v1162_v23 = vmul.f32 %v1594_v40, %v1909_v2  ;;  %v1129_v42 = vpop.xlane.xlu0 %1128 }
 0x3bc   :  { %v1139_v48 = vmul.f32 0.00390625, %v1129_v42 }
 0x3bd   :  { %1243 = vst [vmem:[#allocation8 + $0x10] sm:$0xff] %v1227_v33  ;;  %1244 = vst [vmem:[#allocation8 + $0x18] sm:$0xff] %v1228_v37  ;;  %v1195_v44 = vmul.f32 %v1963_v0, %v1161_v41  ;;  %v1196_v53 = vmul.f32 %v1965_v1, %v1162_v23  ;;  %v1132_v45 = vpop.xlane.xlu1 %1131 }
 0x3be   :  { %v1596_v57 = vpop.eup %1595  ;;  %v1147_v47 = vadd.f32 1e-05, %v1139_v48  ;;  %v1140_v63 = vmul.f32 0.00390625, %v1132_v45 }
 0x3bf   :  { %v1229_v6 = vadd.f32 %v1967_v9, %v1195_v44  ;;  %v1230_v49 = vadd.f32 %v1969_v10, %v1196_v53  ;;  %v1163_v62 = vmul.f32 %v1596_v57, %v1915_v7  ;;  %v1164_v2 = vmul.f32 %v1596_v57, %v1917_v8 }
 0x3c0   :  { %1601 = vrsqrt.f32 %v1147_v47  ;;  %v1148_v50 = vadd.f32 1e-05, %v1140_v63 }
 0x3c1   :  { %1245 = vst [vmem:[#allocation8 + $0x20] sm:$0xff] %v1229_v6  ;;  %1246 = vst [vmem:[#allocation8 + $0x28] sm:$0xff] %v1230_v49  ;;  %v1197_v52 = vmul.f32 %v1963_v0, %v1163_v62  ;;  %v1198_v54 = vmul.f32 %v1965_v1, %v1164_v2 }
 0x3c2   :  { %v1598_v21 = vpop.eup %1597  ;;  %1603 = vrsqrt.f32 %v1148_v50 }
 0x3c3   :  { %v1231_v51 = vadd.f32 %v1967_v9, %v1197_v52  ;;  %v1232_v30 = vadd.f32 %v1969_v10, %v1198_v54  ;;  %v1165_v39 = vmul.f32 %v1598_v21, %v1923_v13  ;;  %v1166_v7 = vmul.f32 %v1598_v21, %v1925_v14 }
 0x3c4   :  { %v1600_v58 = vpop.eup %1599 }
 0x3c5   :  { %1247 = vst [vmem:[#allocation8 + $0x30] sm:$0xff] %v1231_v51  ;;  %1248 = vst [vmem:[#allocation8 + $0x38] sm:$0xff] %v1232_v30  ;;  %v1199_v8 = vmul.f32 %v1963_v0, %v1165_v39  ;;  %v1200_v59 = vmul.f32 %v1965_v1, %v1166_v7  ;;  %v1167_v60 = vmul.f32 %v1600_v58, %v1927_v16 }
 0x3c6   :  { %v1168_v24 = vmul.f32 %v1600_v58, %v1929_v34 }
 0x3c7   :  { %v1233_v61 = vadd.f32 %v1967_v9, %v1199_v8  ;;  %v1234_v3 = vadd.f32 %v1969_v10, %v1200_v59  ;;  %v1201_v4 = vmul.f32 %v1963_v0, %v1167_v60 }
 0x3c8   :  { %v1202_v13 = vmul.f32 %v1965_v1, %v1168_v24 }
 0x3c9   :  { %1249 = vst [vmem:[#allocation8 + $0x40] sm:$0xff] %v1233_v61  ;;  %1250 = vst [vmem:[#allocation8 + $0x48] sm:$0xff] %v1234_v3  ;;  %v1235_v14 = vadd.f32 %v1967_v9, %v1201_v4 }
 0x3ca   :  { %v1236_v17 = vadd.f32 %v1969_v10, %v1202_v13  ;;  %v1602_v5 = vpop.eup %1601 }
 0x3cb   :  { %1251 = vst [vmem:[#allocation8 + $0x50] sm:$0xff] %v1235_v14  ;;  %v1169_v16 = vmul.f32 %v1602_v5, %v1939_v43  ;;  %v1170_v34 = vmul.f32 %v1602_v5, %v1941_v46 }
 0x3cc   :  { %1252 = vst [vmem:[#allocation8 + $0x58] sm:$0xff] %v1236_v17  ;;  %v1604_v11 = vpop.eup %1603 }
 0x3cd   :  { %v1203_v12 = vmul.f32 %v1963_v0, %v1169_v16  ;;  %v1204_v26 = vmul.f32 %v1965_v1, %v1170_v34  ;;  %v1171_v19 = vmul.f32 %v1604_v11, %v1943_v35  ;;  %v1172_v28 = vmul.f32 %v1604_v11, %v1945_v36 }
 0x3cf   :  { %v1237_v15 = vadd.f32 %v1967_v9, %v1203_v12  ;;  %v1238_v31 = vadd.f32 %v1969_v10, %v1204_v26  ;;  %v1205_v18 = vmul.f32 %v1963_v0, %v1171_v19  ;;  %v1206_v43 = vmul.f32 %v1965_v1, %v1172_v28 }
 0x3d1   :  { %1253 = vst [vmem:[#allocation8 + $0x60] sm:$0xff] %v1237_v15  ;;  %1254 = vst [vmem:[#allocation8 + $0x68] sm:$0xff] %v1238_v31  ;;  %v1239_v46 = vadd.f32 %v1967_v9, %v1205_v18  ;;  %v1240_v20 = vadd.f32 %v1969_v10, %v1206_v43 }
 0x3d3   :  { %1255 = vst [vmem:[#allocation8 + $0x70] sm:$0xff] %v1239_v46  ;;  %1256 = vst [vmem:[#allocation8 + $0x78] sm:$0xff] %v1240_v20 }
 0x3d4   :  { %1682 = shalt.err (!%p1679_p0)
}
 0x3d5   :  { %s1683_s6 = scalar_lea.hbm %s2035_s4, 2048 }
 0x3d6   :  { %p1684_p1 = scmp.ne.s32.totalorder %s2035_s4, %s1683_s6  ;;  %p1687_p2 = scmp.lt.u32.totalorder %s1683_s6, %s2035_s4 }
 0x3d8   :  { %p1689_p3 = pnand %p1687_p2, %p1684_p1 }
 0x3da   :  { %1692 = shalt.err (!%p1689_p3)
}
 0x3db   :  { %s1707_s11 = smov 256   ;;  %s1708_s12 = smov 16  }
 0x3dc   :  { %1268 = dma.vmem_to_hbm [thread:$0]  %s1263_s26, 2048, %s2035_s4, [#allocation4], %s1707_s11, %s1707_s11, %s1708_s12  }
 0x3dd   :  { %1697 = dma.done.wait [#allocation4], 2048  }
 0x3de   :  { %1698 = vsyncadd [#allocation4], 4294965248 }
 0x3df   :  { %1272 = vsyncpa [#allocation3], 1 }
 0x3e0   :  { %1273 = vsyncpa [#allocation6], 1 }
 0x3e1   :  { %1274 = vsyncpa [#allocation4], 1 }

</bundles_post_ra>
